<compile_context>
chip_gen: v7x
topology: tpu7x:2x2x1
jax: 0.10.0
libtpu: 0.0.40
codegen_flags: <defaults>
</compile_context>

<pallas_src>
import functools

import jax
import jax.numpy as jnp
from jax.experimental import pallas as pl
from jax.experimental.pallas import tpu as pltpu

INPUT_DIM = 100
HIDDEN_DIMS = [50, 20]
ENC_DIM = HIDDEN_DIMS[1]
LANES = 128                     # padded feature width for the hidden layers
DEFAULT_TILE_B = 2048           # batch-tile rows (multiple of 8); sweep 2048-4096
VMEM_LIMIT_BYTES = 48 * 1024 * 1024   # ~7 MiB actually used at tb=2048; 48 MiB < v7x's 64 MiB


def _round_up(n, m):
    return ((n + m - 1) // m) * m


def _autoencoder_kernel(x_ref,
                        w1_ref, b1_ref,
                        w2_ref, b2_ref,
                        w3_ref, b3_ref,
                        w4_ref, b4_ref,
                        enc_ref, dec_ref,
                        *, mm_dtype):
    """One batch tile: Linear/ReLU/Linear/ReLU (encoder), Linear/ReLU/Linear/Sigmoid (decoder)."""
    def dense(a, w_ref, b_ref):
        # f32 accumulation always; operands optionally bf16 (v5e / v7x fast path).
        return jnp.dot(a.astype(mm_dtype), w_ref[...],
                       preferred_element_type=jnp.float32) + b_ref[...]

    x = x_ref[...]                                   # (tb, 100) f32
    h1 = jnp.maximum(dense(x, w1_ref, b1_ref), 0.0)   # (tb, 128), real lanes [0,50)
    enc = jnp.maximum(dense(h1, w2_ref, b2_ref), 0.0)  # (tb, 128), real lanes [0,20)
    h3 = jnp.maximum(dense(enc, w3_ref, b3_ref), 0.0)  # (tb, 128), real lanes [0,50)
    dec = jax.nn.sigmoid(dense(h3, w4_ref, b4_ref))     # (tb, 128), real lanes [0,100)

    enc_ref[...] = enc[:, :ENC_DIM].astype(enc_ref.dtype)
    dec_ref[...] = dec[:, :INPUT_DIM].astype(dec_ref.dtype)


def _prepare_params(params, mm_dtype):
    """Pad weights to lane-aligned tiles ([in,out] layout, zero padding) and biases to (1,128)."""
    (w1, b1), (w2, b2), (w3, b3), (w4, b4) = params

    def pad_w(w, rows):
        wp = jnp.zeros((rows, LANES), mm_dtype)
        return wp.at[:w.shape[0], :w.shape[1]].set(w.astype(mm_dtype))

    def pad_b(b):
        bp = jnp.zeros((1, LANES), jnp.float32)
        return bp.at[:, :b.shape[1]].set(b.astype(jnp.float32))

    w1p = pad_w(w1, INPUT_DIM)   # [100, 50]  -> [100, 128]
    w2p = pad_w(w2, LANES)       # [ 50, 20]  -> [128, 128]
    w3p = pad_w(w3, LANES)       # [ 20, 50]  -> [128, 128]
    w4p = pad_w(w4, LANES)       # [ 50,100]  -> [128, 128]
    return (w1p, pad_b(b1), w2p, pad_b(b2), w3p, pad_b(b3), w4p, pad_b(b4))


def deep_sparse_autoencoder(x, params, *, tile_b=DEFAULT_TILE_B, use_bf16_matmul=False):
    """x: [B, 100] float32. params: list of (w, b) with w=[in,out], b=[1,out].
    Returns (encoded [B,20], decoded [B,100]) — same as the PyTorch forward."""
    B, d_in = x.shape
    assert d_in == INPUT_DIM
    mm_dtype = jnp.bfloat16 if use_bf16_matmul else jnp.float32
    packed = _prepare_params(params, mm_dtype)

    # Adaptive batch tiling: keep batch padding small (never round B up to a whole
    # huge tile), and use >= 2 grid steps for reasonably large batches so v7x's two
    # TensorCores can both take work.
    n_tiles = max(1, pl.cdiv(B, tile_b))
    if n_tiles == 1 and B >= 64:
        n_tiles = 2
    tb = _round_up(pl.cdiv(B, n_tiles), 8)
    Bp = n_tiles * tb

    xf = x.astype(jnp.float32)
    if Bp != B:
        xf = jnp.pad(xf, ((0, Bp - B), (0, 0)))       # only pads the (small) batch remainder

    # Weights/biases: VMEM-resident (constant index maps). x / enc / dec: streamed by batch tile.
    w1_spec = pl.BlockSpec((INPUT_DIM, LANES), lambda i: (0, 0))
    w_spec = pl.BlockSpec((LANES, LANES), lambda i: (0, 0))
    b_spec = pl.BlockSpec((1, LANES), lambda i: (0, 0))
    in_specs = [pl.BlockSpec((tb, INPUT_DIM), lambda i: (i, 0)),
                w1_spec, b_spec, w_spec, b_spec, w_spec, b_spec, w_spec, b_spec]
    out_specs = (pl.BlockSpec((tb, ENC_DIM), lambda i: (i, 0)),
                 pl.BlockSpec((tb, INPUT_DIM), lambda i: (i, 0)))
    out_shape = (jax.ShapeDtypeStruct((Bp, ENC_DIM), jnp.float32),
                 jax.ShapeDtypeStruct((Bp, INPUT_DIM), jnp.float32))

    # Advisory cost estimate (padded matmul chain + sigmoid lanes + streamed I/O).
    flops = 2 * (INPUT_DIM * LANES + 3 * LANES * LANES) * Bp
    transcendentals = LANES * Bp
    bytes_accessed = (2 * INPUT_DIM + ENC_DIM) * 4 * Bp \
        + (INPUT_DIM * LANES + 3 * LANES * LANES + 4 * LANES) * 4

    enc, dec = pl.pallas_call(
        functools.partial(_autoencoder_kernel, mm_dtype=mm_dtype),
        out_shape=out_shape,
        grid=(n_tiles,),
        in_specs=in_specs,
        out_specs=out_specs,
        compiler_params=pltpu.CompilerParams(
            dimension_semantics=("parallel",),
            vmem_limit_bytes=VMEM_LIMIT_BYTES),
        cost_estimate=pl.CostEstimate(
            flops=flops,
            transcendentals=transcendentals,
            bytes_accessed=bytes_accessed),
    )(xf, *packed)

    if Bp != B:
        enc, dec = enc[:B], dec[:B]
    return enc, dec


def init_params(key):
    """Deterministic init mirroring nn.Linear's U(-1/sqrt(fan_in), 1/sqrt(fan_in))."""
    dims = [(INPUT_DIM, HIDDEN_DIMS[0]),
            (HIDDEN_DIMS[0], HIDDEN_DIMS[1]),
            (HIDDEN_DIMS[1], HIDDEN_DIMS[0]),
            (HIDDEN_DIMS[0], INPUT_DIM)]
    params = []
    for (fan_in, fan_out) in dims:
        key, kw, kb = jax.random.split(key, 3)
        bound = 1.0 / jnp.sqrt(fan_in)
        w = jax.random.uniform(kw, (fan_in, fan_out), jnp.float32, -bound, bound)
        b = jax.random.uniform(kb, (1, fan_out), jnp.float32, -bound, bound)
        params.append((w, b))
    return params


def reference(x, params):
    """Pure-JAX reference, pinned to highest matmul precision (true f32)."""
    hp = jax.lax.Precision.HIGHEST
    (w1, b1), (w2, b2), (w3, b3), (w4, b4) = params
    h1 = jnp.maximum(jnp.dot(x, w1, precision=hp) + b1, 0.0)
    enc = jnp.maximum(jnp.dot(h1, w2, precision=hp) + b2, 0.0)
    h3 = jnp.maximum(jnp.dot(enc, w3, precision=hp) + b3, 0.0)
    dec = jax.nn.sigmoid(jnp.dot(h3, w4, precision=hp) + b4)
    return enc, dec


if __name__ == "__main__":
    key = jax.random.PRNGKey(0)
    key, kx = jax.random.split(key)
    B = 8
    x = jax.random.uniform(kx, (B, INPUT_DIM), jnp.float32)
    params = init_params(key)

    fwd = jax.jit(deep_sparse_autoencoder)
    enc, dec = fwd(x, params)
    jax.block_until_ready((enc, dec))

    enc_ref, dec_ref = reference(x, params)
    assert enc.shape == (B, HIDDEN_DIMS[1]) and dec.shape == (B, INPUT_DIM)
    # Tolerance covers possible MXU pass-count differences between the Pallas dot and
    # the XLA reference; any layout/weight bug would produce O(1e-1) errors.
    assert jnp.allclose(enc, enc_ref, atol=2e-3, rtol=2e-3)
    assert jnp.allclose(dec, dec_ref, atol=2e-3, rtol=2e-3)
    print("KERNEL_OK")
</pallas_src>

<mosaic_0001>
module attributes {stable_mosaic.version = 11 : i64} {
  func.func @_autoencoder_kernel(%arg0: i32, %arg1: memref<8x100xf32, #tpu.memory_space<vmem>>, %arg2: memref<100x128xf32, #tpu.memory_space<vmem>>, %arg3: memref<1x128xf32, #tpu.memory_space<vmem>>, %arg4: memref<128x128xf32, #tpu.memory_space<vmem>>, %arg5: memref<1x128xf32, #tpu.memory_space<vmem>>, %arg6: memref<128x128xf32, #tpu.memory_space<vmem>>, %arg7: memref<1x128xf32, #tpu.memory_space<vmem>>, %arg8: memref<128x128xf32, #tpu.memory_space<vmem>>, %arg9: memref<1x128xf32, #tpu.memory_space<vmem>>, %arg10: memref<8x20xf32, #tpu.memory_space<vmem>>, %arg11: memref<8x100xf32, #tpu.memory_space<vmem>>) attributes {dimension_semantics = [#tpu.dimension_semantics<parallel>], iteration_bounds = array<i64: 1>, scalar_prefetch = 0 : i64, scratch_operands = 0 : i64, tpu.core_type = #tpu.core_type<tc>, window_params = [{transform_indices = @transform_0, window_bounds = array<i64: 8, 100>}, {pipeline_mode = #tpu.pipeline_mode<synchronous>, transform_indices = @transform_1, window_bounds = array<i64: 100, 128>}, {pipeline_mode = #tpu.pipeline_mode<synchronous>, transform_indices = @transform_2, window_bounds = array<i64: 1, 128>}, {pipeline_mode = #tpu.pipeline_mode<synchronous>, transform_indices = @transform_3, window_bounds = array<i64: 128, 128>}, {pipeline_mode = #tpu.pipeline_mode<synchronous>, transform_indices = @transform_4, window_bounds = array<i64: 1, 128>}, {pipeline_mode = #tpu.pipeline_mode<synchronous>, transform_indices = @transform_5, window_bounds = array<i64: 128, 128>}, {pipeline_mode = #tpu.pipeline_mode<synchronous>, transform_indices = @transform_6, window_bounds = array<i64: 1, 128>}, {pipeline_mode = #tpu.pipeline_mode<synchronous>, transform_indices = @transform_7, window_bounds = array<i64: 128, 128>}, {pipeline_mode = #tpu.pipeline_mode<synchronous>, transform_indices = @transform_8, window_bounds = array<i64: 1, 128>}, {transform_indices = @transform_9, window_bounds = array<i64: 8, 20>}, {transform_indices = @transform_10, window_bounds = array<i64: 8, 100>}]} {
    %c0 = arith.constant 0 : index
    %c0_0 = arith.constant 0 : index
    %0 = vector.load %arg1[%c0, %c0_0] : memref<8x100xf32, #tpu.memory_space<vmem>>, vector<8x100xf32>
    %c0_1 = arith.constant 0 : index
    %c0_2 = arith.constant 0 : index
    %1 = vector.load %arg2[%c0_1, %c0_2] : memref<100x128xf32, #tpu.memory_space<vmem>>, vector<100x128xf32>
    %cst = arith.constant dense<0.000000e+00> : vector<8x128xf32>
    %2 = tpu.matmul %0, %1, %cst {dimension_numbers = #tpu.dot_dimension_numbers<[1], [0], [0], [1], [0, 0, 1, 1], [], []>} : vector<8x100xf32>, vector<100x128xf32>, vector<8x128xf32> -> vector<8x128xf32>
    %c0_3 = arith.constant 0 : index
    %c0_4 = arith.constant 0 : index
    %3 = vector.load %arg3[%c0_3, %c0_4] : memref<1x128xf32, #tpu.memory_space<vmem>>, vector<1x128xf32>
    %4 = vector.broadcast %3 : vector<1x128xf32> to vector<8x128xf32>
    %5 = arith.addf %2, %4 : vector<8x128xf32>
    %cst_5 = arith.constant 0.000000e+00 : f32
    %6 = vector.broadcast %cst_5 : f32 to vector<8x128xf32>
    %7 = arith.maximumf %5, %6 : vector<8x128xf32>
    %c0_6 = arith.constant 0 : index
    %c0_7 = arith.constant 0 : index
    %8 = vector.load %arg4[%c0_6, %c0_7] : memref<128x128xf32, #tpu.memory_space<vmem>>, vector<128x128xf32>
    %cst_8 = arith.constant dense<0.000000e+00> : vector<8x128xf32>
    %9 = tpu.matmul %7, %8, %cst_8 {dimension_numbers = #tpu.dot_dimension_numbers<[1], [0], [0], [1], [0, 0, 1, 1], [], []>} : vector<8x128xf32>, vector<128x128xf32>, vector<8x128xf32> -> vector<8x128xf32>
    %c0_9 = arith.constant 0 : index
    %c0_10 = arith.constant 0 : index
    %10 = vector.load %arg5[%c0_9, %c0_10] : memref<1x128xf32, #tpu.memory_space<vmem>>, vector<1x128xf32>
    %11 = vector.broadcast %10 : vector<1x128xf32> to vector<8x128xf32>
    %12 = arith.addf %9, %11 : vector<8x128xf32>
    %cst_11 = arith.constant 0.000000e+00 : f32
    %13 = vector.broadcast %cst_11 : f32 to vector<8x128xf32>
    %14 = arith.maximumf %12, %13 : vector<8x128xf32>
    %c0_12 = arith.constant 0 : index
    %c0_13 = arith.constant 0 : index
    %15 = vector.load %arg6[%c0_12, %c0_13] : memref<128x128xf32, #tpu.memory_space<vmem>>, vector<128x128xf32>
    %cst_14 = arith.constant dense<0.000000e+00> : vector<8x128xf32>
    %16 = tpu.matmul %14, %15, %cst_14 {dimension_numbers = #tpu.dot_dimension_numbers<[1], [0], [0], [1], [0, 0, 1, 1], [], []>} : vector<8x128xf32>, vector<128x128xf32>, vector<8x128xf32> -> vector<8x128xf32>
    %c0_15 = arith.constant 0 : index
    %c0_16 = arith.constant 0 : index
    %17 = vector.load %arg7[%c0_15, %c0_16] : memref<1x128xf32, #tpu.memory_space<vmem>>, vector<1x128xf32>
    %18 = vector.broadcast %17 : vector<1x128xf32> to vector<8x128xf32>
    %19 = arith.addf %16, %18 : vector<8x128xf32>
    %cst_17 = arith.constant 0.000000e+00 : f32
    %20 = vector.broadcast %cst_17 : f32 to vector<8x128xf32>
    %21 = arith.maximumf %19, %20 : vector<8x128xf32>
    %c0_18 = arith.constant 0 : index
    %c0_19 = arith.constant 0 : index
    %22 = vector.load %arg8[%c0_18, %c0_19] : memref<128x128xf32, #tpu.memory_space<vmem>>, vector<128x128xf32>
    %cst_20 = arith.constant dense<0.000000e+00> : vector<8x128xf32>
    %23 = tpu.matmul %21, %22, %cst_20 {dimension_numbers = #tpu.dot_dimension_numbers<[1], [0], [0], [1], [0, 0, 1, 1], [], []>} : vector<8x128xf32>, vector<128x128xf32>, vector<8x128xf32> -> vector<8x128xf32>
    %c0_21 = arith.constant 0 : index
    %c0_22 = arith.constant 0 : index
    %24 = vector.load %arg9[%c0_21, %c0_22] : memref<1x128xf32, #tpu.memory_space<vmem>>, vector<1x128xf32>
    %25 = vector.broadcast %24 : vector<1x128xf32> to vector<8x128xf32>
    %26 = arith.addf %23, %25 : vector<8x128xf32>
    %27 = arith.negf %26 : vector<8x128xf32>
    %28 = math.exp %27 : vector<8x128xf32>
    %cst_23 = arith.constant 1.000000e+00 : f32
    %29 = vector.broadcast %cst_23 : f32 to vector<8x128xf32>
    %30 = arith.addf %29, %28 : vector<8x128xf32>
    %31 = arith.divf %29, %30 : vector<8x128xf32>
    %32 = vector.extract_strided_slice %14 {offsets = [0, 0], sizes = [8, 20], strides = [1, 1]} : vector<8x128xf32> to vector<8x20xf32>
    %c0_24 = arith.constant 0 : index
    %c0_25 = arith.constant 0 : index
    %33 = vector.load %arg10[%c0_24, %c0_25] : memref<8x20xf32, #tpu.memory_space<vmem>>, vector<8x20xf32>
    tpu.vector_store %arg10[%c0_24, %c0_25], %32 {strides = array<i32>} : memref<8x20xf32, #tpu.memory_space<vmem>>, vector<8x20xf32>,
    %34 = vector.extract_strided_slice %31 {offsets = [0, 0], sizes = [8, 100], strides = [1, 1]} : vector<8x128xf32> to vector<8x100xf32>
    %c0_26 = arith.constant 0 : index
    %c0_27 = arith.constant 0 : index
    %35 = vector.load %arg11[%c0_26, %c0_27] : memref<8x100xf32, #tpu.memory_space<vmem>>, vector<8x100xf32>
    tpu.vector_store %arg11[%c0_26, %c0_27], %34 {strides = array<i32>} : memref<8x100xf32, #tpu.memory_space<vmem>>, vector<8x100xf32>,
    return
  }
  func.func @transform_0(%arg0: i32) -> (i32, i32) {
    %c0_i32 = arith.constant 0 : i32
    %c0_i32_0 = arith.constant 0 : i32
    return %arg0, %c0_i32 : i32, i32
  }
  func.func @transform_1(%arg0: i32) -> (i32, i32) {
    %c0_i32 = arith.constant 0 : i32
    %c0_i32_0 = arith.constant 0 : i32
    %c0_i32_1 = arith.constant 0 : i32
    return %c0_i32, %c0_i32_0 : i32, i32
  }
  func.func @transform_2(%arg0: i32) -> (i32, i32) {
    %c0_i32 = arith.constant 0 : i32
    %c0_i32_0 = arith.constant 0 : i32
    %c0_i32_1 = arith.constant 0 : i32
    return %c0_i32, %c0_i32_0 : i32, i32
  }
  func.func @transform_3(%arg0: i32) -> (i32, i32) {
    %c0_i32 = arith.constant 0 : i32
    %c0_i32_0 = arith.constant 0 : i32
    %c0_i32_1 = arith.constant 0 : i32
    return %c0_i32, %c0_i32_0 : i32, i32
  }
  func.func @transform_4(%arg0: i32) -> (i32, i32) {
    %c0_i32 = arith.constant 0 : i32
    %c0_i32_0 = arith.constant 0 : i32
    %c0_i32_1 = arith.constant 0 : i32
    return %c0_i32, %c0_i32_0 : i32, i32
  }
  func.func @transform_5(%arg0: i32) -> (i32, i32) {
    %c0_i32 = arith.constant 0 : i32
    %c0_i32_0 = arith.constant 0 : i32
    %c0_i32_1 = arith.constant 0 : i32
    return %c0_i32, %c0_i32_0 : i32, i32
  }
  func.func @transform_6(%arg0: i32) -> (i32, i32) {
    %c0_i32 = arith.constant 0 : i32
    %c0_i32_0 = arith.constant 0 : i32
    %c0_i32_1 = arith.constant 0 : i32
    return %c0_i32, %c0_i32_0 : i32, i32
  }
  func.func @transform_7(%arg0: i32) -> (i32, i32) {
    %c0_i32 = arith.constant 0 : i32
    %c0_i32_0 = arith.constant 0 : i32
    %c0_i32_1 = arith.constant 0 : i32
    return %c0_i32, %c0_i32_0 : i32, i32
  }
  func.func @transform_8(%arg0: i32) -> (i32, i32) {
    %c0_i32 = arith.constant 0 : i32
    %c0_i32_0 = arith.constant 0 : i32
    %c0_i32_1 = arith.constant 0 : i32
    return %c0_i32, %c0_i32_0 : i32, i32
  }
  func.func @transform_9(%arg0: i32) -> (i32, i32) {
    %c0_i32 = arith.constant 0 : i32
    %c0_i32_0 = arith.constant 0 : i32
    return %arg0, %c0_i32 : i32, i32
  }
  func.func @transform_10(%arg0: i32) -> (i32, i32) {
    %c0_i32 = arith.constant 0 : i32
    %c0_i32_0 = arith.constant 0 : i32
    return %arg0, %c0_i32 : i32, i32
  }
}

</mosaic_0001>

<bundles_post_ra>
// kernel: deep_sparse_autoencoder.1
= control target key start
LH: loop header
LB: loop body
LE: loop exit
PB: predicated region body
PF: predicated region fallthrough
CT: control target
= control target key end

     0   :  { %16 = vsyncpa [#allocation3], 0  ;;  %v807_v3 = vmov 0.0|0.0   ;;  %vm808_vm0 = vmmov 0   ;;  %v809_v6 = vmov 0.0   ;;  %s1130_s0 = inlined_call_operand.vmem [shape: f32[8,100], index: 0, kind: input, shape index: {}]   ;;  %s1131_s1 = inlined_call_operand.vmem [shape: f32[100,128], index: 1, kind: input, shape index: {}]   ;;  %s1132_s2 = inlined_call_operand.vmem [shape: f32[1,128], index: 2, kind: input, shape index: {}]   ;;  %s1133_s3 = inlined_call_operand.vmem [shape: f32[128,128], index: 3, kind: input, shape index: {}]   ;;  %s1134_s4 = inlined_call_operand.vmem [shape: f32[1,128], index: 4, kind: input, shape index: {}]   ;;  %s1135_s5 = inlined_call_operand.vmem [shape: f32[128,128], index: 5, kind: input, shape index: {}]   ;;  %s1136_s6 = inlined_call_operand.vmem [shape: f32[1,128], index: 6, kind: input, shape index: {}]   ;;  %s1137_s7 = inlined_call_operand.vmem [shape: f32[128,128], index: 7, kind: input, shape index: {}]   ;;  %s1138_s8 = inlined_call_operand.vmem [shape: f32[1,128], index: 8, kind: input, shape index: {}]   ;;  %s1139_s9 = inlined_call_operand.hbm [shape: f32[8,20], index: 9, kind: output, shape index: {0}]   ;;  %s1140_s10 = inlined_call_operand.hbm [shape: f32[8,100], index: 10, kind: output, shape index: {1}]  }
   0x1   :  { %v37_v0 = vld [vmem:[%s1131_s1] sm:$0xff]  ;;  %v38_v1 = vld [vmem:[%s1131_s1 + $0x8] sm:$0xff]  ;;  %v39_v2 = vld [vmem:[%s1131_s1 + $0x10] sm:$0xff]  ;;  %660 = vmatprep.subr.bf16.mxu0 %v807_v3  ;;  %678 = vmatprep.subr.bf16.mxu1 %v807_v3 }
   0x2   :  { %v661_v4 = vpack.c.bf16 %v38_v1, %v37_v0  ;;  %v40_v5 = vld [vmem:[%s1131_s1 + $0x18] sm:$0xff]  ;;  %552 = vmatprep.mubr.msk.f32.mxu0 %vm808_vm0, %v809_v6  ;;  %587 = vmatprep.mubr.msk.f32.mxu1 %vm808_vm0, %v809_v6  ;;  %v41_v8 = vld [vmem:[%s1131_s1 + $0x20] sm:$0xff]  ;;  %v42_v9 = vld [vmem:[%s1131_s1 + $0x28] sm:$0xff] }
   0x3   :  { %v664_v7 = vpack.c.bf16 %v40_v5, %v39_v2  ;;  %v136_v10 = vld [vmem:[%s1133_s3] sm:$0xff]  ;;  %v137_v11 = vld [vmem:[%s1133_s3 + $0x8] sm:$0xff]  ;;  %v138_v12 = vld [vmem:[%s1133_s3 + $0x10] sm:$0xff]  ;;  %v667_v15 = vpack.c.bf16 %v42_v9, %v41_v8 }
   0x4   :  { %662 = vmatpush3.bf16.msra.mxu0 %v661_v4  ;;  %v139_v13 = vld [vmem:[%s1133_s3 + $0x18] sm:$0xff]  ;;  %v679_v14 = vpack.c.bf16 %v137_v11, %v136_v10  ;;  %v43_v16 = vld [vmem:[%s1131_s1 + $0x30] sm:$0xff]  ;;  %v140_v19 = vld [vmem:[%s1133_s3 + $0x20] sm:$0xff] }
   0x5   :  { %663 = vmatprep.subr.bf16.mxu0 %v807_v3  ;;  %v44_v17 = vld [vmem:[%s1131_s1 + $0x38] sm:$0xff]  ;;  %v682_v18 = vpack.c.bf16 %v139_v13, %v138_v12  ;;  %v141_v20 = vld [vmem:[%s1133_s3 + $0x28] sm:$0xff] }
   0x6   :  { %680 = vmatpush3.bf16.msra.mxu1 %v679_v14 }
   0x7   :  { %681 = vmatprep.subr.bf16.mxu1 %v807_v3 }
   0x8   :  { %665 = vmatpush3.bf16.msra.mxu0 %v664_v7 }
   0x9   :  { %666 = vmatprep.subr.bf16.mxu0 %v807_v3 }
   0xa   :  { %17 = vsyncpa [#allocation5], 0  ;;  %v670_v21 = vpack.c.bf16 %v44_v17, %v43_v16  ;;  %v45_v22 = vld [vmem:[%s1131_s1 + $0x40] sm:$0xff]  ;;  %v46_v23 = vld [vmem:[%s1131_s1 + $0x48] sm:$0xff]  ;;  %683 = vmatpush3.bf16.msra.mxu1 %v682_v18  ;;  %v685_v24 = vpack.c.bf16 %v141_v20, %v140_v19  ;;  %vm61_vm1 = vcmask 1043456   ;;  %vm57_vm2 = vcmask 818176  }
   0xb   :  { %684 = vmatprep.subr.bf16.mxu1 %v807_v3  ;;  %v142_v25 = vld [vmem:[%s1133_s3 + $0x30] sm:$0xff]  ;;  %v143_v26 = vld [vmem:[%s1133_s3 + $0x38] sm:$0xff]  ;;  %v673_v27 = vpack.c.bf16 %v46_v23, %v45_v22  ;;  %v144_v31 = vld [vmem:[%s1133_s3 + $0x40] sm:$0xff]  ;;  %vm423_vm3 = vcmask 162816  }
   0xc   :  { %668 = vmatpush3.bf16.msra.mxu0 %v667_v15  ;;  %v47_v28 = vld [vmem:[%s1131_s1 + $0x50] sm:$0xff]  ;;  %v48_v29 = vld [vmem:[%s1131_s1 + $0x58] sm:$0xff]  ;;  %v688_v30 = vpack.c.bf16 %v143_v26, %v142_v25  ;;  %v145_v32 = vld [vmem:[%s1133_s3 + $0x48] sm:$0xff] }
   0xd   :  { %669 = vmatprep.subr.bf16.mxu0 %v807_v3  ;;  %v676_v33 = vpack.c.bf16 %v48_v29, %v47_v28  ;;  %v691_v34 = vpack.c.bf16 %v145_v32, %v144_v31  ;;  %v146_v35 = vld [vmem:[%s1133_s3 + $0x50] sm:$0xff]  ;;  %v147_v36 = vld [vmem:[%s1133_s3 + $0x58] sm:$0xff]  ;;  %v49_v37 = vld [vmem:[%s1131_s1 + $0x60] sm:$0xf] }
   0xe   :  { %686 = vmatpush3.bf16.msra.mxu1 %v685_v24  ;;  %v694_v38 = vpack.c.bf16 %v147_v36, %v146_v35  ;;  %v36_v39 = vld [vmem:[%s1130_s0] sm:$0xff]  ;;  %v149_v41 = vld [vmem:[%s1133_s3 + $0x68] sm:$0xff]  ;;  %v150_v43 = vld [vmem:[%s1133_s3 + $0x70] sm:$0xff] }
   0xf   :  { %687 = vmatprep.subr.bf16.mxu1 %v807_v3  ;;  %v148_v40 = vld [vmem:[%s1133_s3 + $0x60] sm:$0xff]  ;;  %v151_v44 = vld [vmem:[%s1133_s3 + $0x78] sm:$0xff]  ;;  %v231_v47 = vld [vmem:[%s1135_s5 + $0x8] sm:$0xff] }
  0x10   :  { %671 = vmatpush3.bf16.msra.mxu0 %v670_v21  ;;  %v697_v42 = vpack.c.bf16 %v149_v41, %v148_v40  ;;  %v700_v45 = vpack.c.bf16 %v151_v44, %v150_v43  ;;  %v230_v46 = vld [vmem:[%s1135_s5] sm:$0xff]  ;;  %v232_v48 = vld [vmem:[%s1135_s5 + $0x10] sm:$0xff]  ;;  %v233_v50 = vld [vmem:[%s1135_s5 + $0x18] sm:$0xff] }
  0x11   :  { %672 = vmatprep.subr.bf16.mxu0 %v807_v3  ;;  %v703_v49 = vpack.c.bf16 %v231_v47, %v230_v46  ;;  %v706_v51 = vpack.c.bf16 %v233_v50, %v232_v48  ;;  %v234_v52 = vld [vmem:[%s1135_s5 + $0x20] sm:$0xff]  ;;  %v235_v53 = vld [vmem:[%s1135_s5 + $0x28] sm:$0xff]  ;;  %v236_v55 = vld [vmem:[%s1135_s5 + $0x30] sm:$0xff] }
  0x12   :  { %689 = vmatpush3.bf16.msra.mxu1 %v688_v30  ;;  %v709_v54 = vpack.c.bf16 %v235_v53, %v234_v52  ;;  %v237_v56 = vld [vmem:[%s1135_s5 + $0x38] sm:$0xff]  ;;  %v238_v58 = vld [vmem:[%s1135_s5 + $0x40] sm:$0xff]  ;;  %v239_v59 = vld [vmem:[%s1135_s5 + $0x48] sm:$0xff] }
  0x13   :  { %690 = vmatprep.subr.bf16.mxu1 %v807_v3  ;;  %v712_v57 = vpack.c.bf16 %v237_v56, %v236_v55  ;;  %v715_v60 = vpack.c.bf16 %v239_v59, %v238_v58  ;;  %v240_v61 = vld [vmem:[%s1135_s5 + $0x50] sm:$0xff]  ;;  %v241_v62 = vld [vmem:[%s1135_s5 + $0x58] sm:$0xff]  ;;  %v242_v0 = vld [vmem:[%s1135_s5 + $0x60] sm:$0xff] }
  0x14   :  { %674 = vmatpush3.bf16.msra.mxu0 %v673_v27  ;;  %v718_v63 = vpack.c.bf16 %v241_v62, %v240_v61  ;;  %v243_v1 = vld [vmem:[%s1135_s5 + $0x68] sm:$0xff]  ;;  %v454_v4 = vld [vmem:[%s1132_s2] ss:$0 sm:$0xff]  ;;  %v244_v10 = vld [vmem:[%s1135_s5 + $0x70] sm:$0xff] }
  0x15   :  { %675 = vmatprep.subr.bf16.mxu0 %v807_v3  ;;  %v721_v2 = vpack.c.bf16 %v243_v1, %v242_v0  ;;  %v245_v11 = vld [vmem:[%s1135_s5 + $0x78] sm:$0xff]  ;;  %v324_v13 = vld [vmem:[%s1137_s7] sm:$0xff]  ;;  %v325_v14 = vld [vmem:[%s1137_s7 + $0x8] sm:$0xff] }
  0x16   :  { %692 = vmatpush3.bf16.msra.mxu1 %v691_v34  ;;  %v724_v12 = vpack.c.bf16 %v245_v11, %v244_v10  ;;  %v727_v15 = vpack.c.bf16 %v325_v14, %v324_v13  ;;  %v327_v16 = vld [vmem:[%s1137_s7 + $0x18] sm:$0xff]  ;;  %v328_v18 = vld [vmem:[%s1137_s7 + $0x20] sm:$0xff]  ;;  %v329_v19 = vld [vmem:[%s1137_s7 + $0x28] sm:$0xff] }
  0x17   :  { %693 = vmatprep.subr.bf16.mxu1 %v807_v3  ;;  %v733_v20 = vpack.c.bf16 %v329_v19, %v328_v18  ;;  %v330_v21 = vld [vmem:[%s1137_s7 + $0x30] sm:$0xff]  ;;  %v331_v22 = vld [vmem:[%s1137_s7 + $0x38] sm:$0xff]  ;;  %v332_v24 = vld [vmem:[%s1137_s7 + $0x40] sm:$0xff] }
  0x18   :  { %677 = vmatpush3.bf16.msra.mxu0 %v676_v33  ;;  %v736_v23 = vpack.c.bf16 %v331_v22, %v330_v21  ;;  %v333_v25 = vld [vmem:[%s1137_s7 + $0x48] sm:$0xff]  ;;  %v334_v27 = vld [vmem:[%s1137_s7 + $0x50] sm:$0xff]  ;;  %v335_v28 = vld [vmem:[%s1137_s7 + $0x58] sm:$0xff] }
  0x19   :  { %550 = vmatprep.subr.mxu0 %v809_v6  ;;  %v739_v26 = vpack.c.bf16 %v333_v25, %v332_v24  ;;  %v742_v29 = vpack.c.bf16 %v335_v28, %v334_v27  ;;  %v336_v30 = vld [vmem:[%s1137_s7 + $0x60] sm:$0xff]  ;;  %v337_v31 = vld [vmem:[%s1137_s7 + $0x68] sm:$0xff] }
  0x1a   :  { %695 = vmatpush3.bf16.msra.mxu1 %v694_v38  ;;  %v745_v32 = vpack.c.bf16 %v337_v31, %v336_v30  ;;  %v457_v33 = vld [vmem:[%s1134_s4] ss:$0 sm:$0xff]  ;;  %v338_v38 = vld [vmem:[%s1137_s7 + $0x70] sm:$0xff]  ;;  %s810_s4 = smov [#allocation2]  }
  0x1b   :  { %696 = vmatprep.subr.bf16.mxu1 %v807_v3  ;;  %v458_v40 = vld [vmem:[%s1136_s6] ss:$0 sm:$0xff]  ;;  %s432_s1 = sshll.u32 %s810_s4, 4  ;;  %s433_s1 = int_to_ptr.vmem [resolvable:$true] %s432_s1 }
  0x1c   :  { %551 = vmatpush3.msk.msra.mxu0 %vm61_vm1, %v49_v37  ;;  %s759_s29 = scalar_lea.vmem %s433_s1, 128  ;;  %p764_p1 = scmp.lt.s32.totalorder %s433_s1, %s433_s1 }
  0x1d   :  { %553 = vmatmul.mubr.msk.f32.vlgmr.msra.gmra.mrb[0].mxu0 %vm57_vm2, %v36_v39  ;;  %702 = vmatprep.subr.bf16.mxu0 %v807_v3  ;;  %v339_v39 = vld [vmem:[%s1137_s7 + $0x78] sm:$0xff]  ;;  %p760_p0 = scmp.ne.s32.totalorder %s433_s1, %s759_s29  ;;  %p765_p2 = scmp.lt.s32.totalorder %s759_s29, %s759_s29 }
  0x1e   :  { %622 = vmatprep.mubr.msk.f32.mxu0 %vm808_vm0, %v809_v6  ;;  %698 = vmatpush3.bf16.msra.mxu1 %v697_v42 }
  0x1f   :  { %699 = vmatprep.subr.bf16.mxu1 %v807_v3  ;;  %704 = vmatpush3.bf16.msra.mxu0 %v703_v49  ;;  %p766_p3 = por %p765_p2, %p764_p1 }
  0x20   :  { %705 = vmatprep.subr.bf16.mxu0 %v807_v3 }
  0x21   :  { %p767_p4 = pnand %p766_p3, %p760_p0 }
  0x22   :  { %701 = vmatpush3.bf16.msra.mxu1 %v700_v45 }
  0x23   :  { %726 = vmatprep.subr.bf16.mxu1 %v807_v3  ;;  %707 = vmatpush3.bf16.msra.mxu0 %v706_v51 }
  0x24   :  { %708 = vmatprep.subr.bf16.mxu0 %v807_v3 }
  0x27   :  { %710 = vmatpush3.bf16.msra.mxu0 %v709_v54 }
  0x28   :  { %711 = vmatprep.subr.bf16.mxu0 %v807_v3 }
  0x2b   :  { %713 = vmatpush3.bf16.msra.mxu0 %v712_v57 }
  0x2c   :  { %714 = vmatprep.subr.bf16.mxu0 %v807_v3 }
  0x2f   :  { %716 = vmatpush3.bf16.msra.mxu0 %v715_v60 }
  0x30   :  { %717 = vmatprep.subr.bf16.mxu0 %v807_v3 }
  0x33   :  { %719 = vmatpush3.bf16.msra.mxu0 %v718_v63 }
  0x34   :  { %720 = vmatprep.subr.bf16.mxu0 %v807_v3 }
  0x37   :  { %722 = vmatpush3.bf16.msra.mxu0 %v721_v2 }
  0x38   :  { %723 = vmatprep.subr.bf16.mxu0 %v807_v3 }
  0x3b   :  { %725 = vmatpush3.bf16.msra.mxu0 %v724_v12 }
  0xf0   :  { %v131_v5 = vpop.f32.mrb[0].mxu0 }
  0xf1   :  { %v132_v7 = vadd.f32 %v454_v4, %v131_v5  ;;  %v554_v8 = vpop.f32.mrb[1].mxu0 }
  0xf3   :  { %v135_v9 = vmax.f32 %v132_v7, 0.0 }
  0xf5   :  { %588 = vmatmul.mubr.f32.vlgmr.msra.gmra.mrb[0].mxu1 %v135_v9 }
  0xf6   :  { %657 = vmatprep.mubr.msk.f32.mxu1 %vm808_vm0, %v809_v6  ;;  %v326_v6 = vld [vmem:[%s1137_s7 + $0x10] sm:$0xff]  ;;  %728 = vmatpush3.bf16.msra.mxu1 %v727_v15 }
  0xf7   :  { %v730_v17 = vpack.c.bf16 %v327_v16, %v326_v6  ;;  %729 = vmatprep.subr.bf16.mxu1 %v807_v3 }
  0xfa   :  { %731 = vmatpush3.bf16.msra.mxu1 %v730_v17 }
  0xfb   :  { %732 = vmatprep.subr.bf16.mxu1 %v807_v3 }
  0xfe   :  { %734 = vmatpush3.bf16.msra.mxu1 %v733_v20 }
  0xff   :  { %735 = vmatprep.subr.bf16.mxu1 %v807_v3 }
 0x102   :  { %737 = vmatpush3.bf16.msra.mxu1 %v736_v23 }
 0x103   :  { %738 = vmatprep.subr.bf16.mxu1 %v807_v3 }
 0x106   :  { %740 = vmatpush3.bf16.msra.mxu1 %v739_v26 }
 0x107   :  { %741 = vmatprep.subr.bf16.mxu1 %v807_v3 }
 0x10a   :  { %743 = vmatpush3.bf16.msra.mxu1 %v742_v29 }
 0x10b   :  { %744 = vmatprep.subr.bf16.mxu1 %v807_v3 }
 0x10e   :  { %746 = vmatpush3.bf16.msra.mxu1 %v745_v32 }
 0x10f   :  { %747 = vmatprep.subr.bf16.mxu1 %v807_v3  ;;  %v748_v3 = vpack.c.bf16 %v339_v39, %v338_v38 }
 0x112   :  { %749 = vmatpush3.bf16.msra.mxu1 %v748_v3 }
 0x1c8   :  { %v225_v34 = vpop.f32.mrb[0].mxu1 }
 0x1c9   :  { %v226_v35 = vadd.f32 %v457_v33, %v225_v34  ;;  %v589_v36 = vpop.f32.mrb[1].mxu1 }
 0x1cb   :  { %v229_v37 = vmax.f32 %v226_v35, 0.0 }
 0x1cd   :  { %623 = vmatmul.mubr.f32.vlgmr.msra.gmra.mrb[2].mxu0 %v229_v37  ;;  %424 = vst.msk [vmem:[#allocation2] sm:$0xff] %vm423_vm3, %v229_v37 }
 0x2a0   :  { %v319_v41 = vpop.f32.mrb[2].mxu0 }
 0x2a1   :  { %v320_v42 = vadd.f32 %v458_v40, %v319_v41  ;;  %v624_v43 = vpop.f32.mrb[3].mxu0 }
 0x2a3   :  { %v323_v44 = vmax.f32 %v320_v42, 0.0 }
 0x2a5   :  { %658 = vmatmul.mubr.f32.vlgmr.msra.gmra.mrb[2].mxu1 %v323_v44 }
 0x2a6   :  { %770 = shalt.err (!%p767_p4)
}
 0x2a7   :  { %s771_s11 = scalar_lea.hbm %s1139_s9, 128 }
 0x2a8   :  { %p772_p5 = scmp.ne.s32.totalorder %s1139_s9, %s771_s11  ;;  %p775_p6 = scmp.lt.u32.totalorder %s771_s11, %s1139_s9 }
 0x2aa   :  { %p777_p7 = pnand %p775_p6, %p772_p5 }
 0x2ac   :  { %780 = shalt.err (!%p777_p7)
}
 0x2ad   :  { %435 = dma.vmem_to_hbm [thread:$0]  %s433_s1, 128, %s1139_s9, [#allocation3]   ;;  %v459_v45 = vld [vmem:[%s1138_s8] ss:$0 sm:$0xff] }
 0x2ae   :  { %s811_s3 = smov [#allocation4]  }
 0x2af   :  { %s442_s19 = sshll.u32 %s811_s3, 4  ;;  %s443_s19 = int_to_ptr.vmem [resolvable:$true] %s442_s19 }
 0x2b0   :  { %s781_s20 = scalar_lea.vmem %s443_s19, 128  ;;  %p786_p9 = scmp.lt.s32.totalorder %s443_s19, %s443_s19 }
 0x2b1   :  { %p782_p8 = scmp.ne.s32.totalorder %s443_s19, %s781_s20  ;;  %p787_p10 = scmp.lt.s32.totalorder %s781_s20, %s781_s20 }
 0x2b3   :  { %p788_p11 = por %p787_p10, %p786_p9 }
 0x2b5   :  { %p789_p12 = pnand %p788_p11, %p782_p8 }
 0x378   :  { %v413_v46 = vpop.f32.mrb[2].mxu1 }
 0x379   :  { %v414_v47 = vadd.f32 %v459_v45, %v413_v46  ;;  %v659_v48 = vpop.f32.mrb[3].mxu1 }
 0x37b   :  { %v460_v49 = vmul.f32 -1.442695, %v414_v47 }
 0x37d   :  { %755 = vpow2.f32 %v460_v49 }
 0x387   :  { %v756_v50 = vpop.eup %755 }
 0x388   :  { %v420_v51 = vadd.f32 1.0, %v756_v50 }
 0x38a   :  { %757 = vrcp.f32 %v420_v51 }
 0x394   :  { %v758_v52 = vpop.eup %757 }
 0x395   :  { %425 = vst.msk [vmem:[#allocation4] sm:$0xff] %vm57_vm2, %v758_v52 }
 0x396   :  { %792 = shalt.err (!%p789_p12)
}
 0x397   :  { %s793_s21 = scalar_lea.hbm %s1140_s10, 128 }
 0x398   :  { %p794_p13 = scmp.ne.s32.totalorder %s1140_s10, %s793_s21  ;;  %p797_p0 = scmp.lt.u32.totalorder %s793_s21, %s1140_s10 }
 0x39a   :  { %p799_p1 = pnand %p797_p0, %p794_p13 }
 0x39c   :  { %802 = shalt.err (!%p799_p1)
}
 0x39d   :  { %445 = dma.vmem_to_hbm [thread:$0]  %s443_s19, 128, %s1140_s10, [#allocation5]  }
 0x39e   :  { %803 = dma.done.wait [#allocation3], 128  }
 0x39f   :  { %804 = vsyncadd [#allocation3], 4294967168 }
 0x3a0   :  { %805 = dma.done.wait [#allocation5], 128  }
 0x3a1   :  { %806 = vsyncadd [#allocation5], 4294967168 }
 0x3a2   :  { %452 = vsyncpa [#allocation3], 1 }
 0x3a3   :  { %453 = vsyncpa [#allocation5], 1 }

</bundles_post_ra>
